<compile_context>
chip_gen: v6e
topology: v6e:2x2x1
jax: 0.10.0
libtpu: 0.0.40
codegen_flags: <defaults>
</compile_context>

<pallas_src>
import math

import jax
import jax.numpy as jnp
from jax import lax
from jax.experimental import pallas as pl
from jax.experimental.pallas import tpu as pltpu


def _block_partials(pred, gt, valid_rows):
    """Per-block (loss_sum, num_pos_sum) with where()-select gating.

    valid_rows: None for full blocks, or a traced int32 scalar giving the
    number of in-range rows of a ragged last block (rows beyond it hold
    stale VMEM and must not contribute).
    """
    pred = pred.astype(jnp.float32)
    gt = gt.astype(jnp.float32)

    one_m_pred = 1.0 - pred
    one_m_gt = 1.0 - gt
    t2 = one_m_gt * one_m_gt
    neg_weights = t2 * t2                          # (1 - gt) ** 4
    log_p = jnp.log(pred)                          # EUP
    log_1mp = jnp.log(one_m_pred)                  # EUP

    pos_term = (one_m_pred * one_m_pred) * log_p               # gamma = 2
    neg_term = neg_weights * (pred * pred) * log_1mp

    is_pos = gt == 1.0                             # pos_inds = gt.eq(1)
    is_neg = pred < 1.0                            # neg_inds = pred.lt(1)
    if valid_rows is not None:
        row = lax.broadcasted_iota(jnp.int32, pred.shape, 0)
        in_range = row < valid_rows
        is_pos = jnp.logical_and(is_pos, in_range)
        is_neg = jnp.logical_and(is_neg, in_range)

    # Select-gating: -inf terms (pred==0 / pred==1) and garbage rows pick the
    # 0 branch instead of producing NaNs via 0 * (-inf).
    loss = jnp.where(is_pos, pos_term, 0.0) + jnp.where(is_neg, neg_term, 0.0)
    npos = jnp.where(is_pos, 1.0, 0.0)
    return jnp.sum(loss), jnp.sum(npos)


def _make_focal_kernel(rows, block_rows, ragged):
    """Builds the per-block partial-sum kernel (static params baked in)."""

    def emit(pred_ref, gt_ref, out_ref, valid_rows):
        loss_sum, npos_sum = _block_partials(pred_ref[...], gt_ref[...], valid_rows)
        # One lane-dense (1, 8, 128) tile per block: row 0 / lane 0 carries the
        # loss partial, row 0 / lane 1 the num_pos partial (rest zero).
        sub = lax.broadcasted_iota(jnp.int32, (1, 8, 128), 1)
        lane = lax.broadcasted_iota(jnp.int32, (1, 8, 128), 2)
        out = jnp.where(jnp.logical_and(sub == 0, lane == 0), loss_sum, 0.0)
        out = jnp.where(jnp.logical_and(sub == 0, lane == 1), npos_sum, out)
        out_ref[...] = out

    def kernel(pred_ref, gt_ref, out_ref):
        if not ragged:
            emit(pred_ref, gt_ref, out_ref, None)
        else:
            i = pl.program_id(0)
            is_last = i == (pl.num_programs(0) - 1)

            @pl.when(jnp.logical_not(is_last))
            def _():
                emit(pred_ref, gt_ref, out_ref, None)

            @pl.when(is_last)
            def _():
                emit(pred_ref, gt_ref, out_ref, rows - i * block_rows)

    return kernel


def _pointwise_sums(pred, gt):
    """Plain-JAX (loss_sum, num_pos) for tiny (< 128 element) tails."""
    pred = pred.astype(jnp.float32)
    gt = gt.astype(jnp.float32)
    pos_term = (1.0 - pred) ** 2 * jnp.log(pred)
    neg_term = (1.0 - gt) ** 4 * (pred ** 2) * jnp.log(1.0 - pred)
    is_pos = gt == 1.0
    loss = jnp.where(is_pos, pos_term, 0.0) + jnp.where(pred < 1.0, neg_term, 0.0)
    return jnp.sum(loss), jnp.sum(jnp.where(is_pos, 1.0, 0.0))


def focal_loss(pred, gt, *, max_block_rows=1024):
    """CenterNet focal loss (_neg_loss) over arbitrary-shaped heatmaps."""
    assert pred.shape == gt.shape
    total = math.prod(pred.shape)
    pred_flat = pred.reshape(-1)
    gt_flat = gt.reshape(-1)

    # Lane-dense tiling: widest lane count dividing `total` so the 2-D reshape
    # below is a free bitcast (no padded/sliced copies of the inputs in HBM).
    lanes = 512 if total % 512 == 0 else (256 if total % 256 == 0 else 128)
    rem = total % lanes
    main = total - rem

    if main == 0:
        # Degenerate tiny input: no full 128-lane row to hand the kernel.
        loss_sum, num_pos = _pointwise_sums(pred_flat, gt_flat)
        return jnp.where(num_pos == 0.0, -loss_sum, -loss_sum / num_pos)

    rows = main // lanes
    if rows <= max_block_rows:
        block_rows = rows                                  # block == full dims
    else:
        block_rows = max(16, (max_block_rows // 16) * 16)  # sublane-aligned (bf16-friendly)
    num_blocks = pl.cdiv(rows, block_rows)
    ragged = (rows % block_rows) != 0                      # last block partially valid

    pred2d = (pred_flat if rem == 0 else pred_flat[:main]).reshape(rows, lanes)
    gt2d = (gt_flat if rem == 0 else gt_flat[:main]).reshape(rows, lanes)

    kernel = _make_focal_kernel(rows, block_rows, ragged)

    in_bytes = (jnp.dtype(pred.dtype).itemsize + jnp.dtype(gt.dtype).itemsize) * main
    cost = pl.CostEstimate(
        flops=20 * main,
        transcendentals=2 * main,
        bytes_accessed=in_bytes + num_blocks * 8 * 128 * 4,
    )

    partials = pl.pallas_call(
        kernel,
        out_shape=jax.ShapeDtypeStruct((num_blocks, 8, 128), jnp.float32),
        grid_spec=pltpu.PrefetchScalarGridSpec(
            num_scalar_prefetch=0,
            grid=(num_blocks,),
            in_specs=[
                pl.BlockSpec((block_rows, lanes), lambda i: (i, 0)),
                pl.BlockSpec((block_rows, lanes), lambda i: (i, 0)),
            ],
            out_specs=pl.BlockSpec((1, 8, 128), lambda i: (i, 0, 0)),
        ),
        compiler_params=pltpu.CompilerParams(
            dimension_semantics=("parallel",),
        ),
        cost_estimate=cost,
    )(pred2d, gt2d)

    loss_sum = jnp.sum(partials[:, 0, 0])
    num_pos = jnp.sum(partials[:, 0, 1])

    if rem:
        t_loss, t_npos = _pointwise_sums(pred_flat[main:], gt_flat[main:])
        loss_sum = loss_sum + t_loss
        num_pos = num_pos + t_npos

    # pos_loss sums to exactly 0 when num_pos == 0, so the combined sum is
    # already -neg_loss in that branch (matches the reference's `if`).
    return jnp.where(num_pos == 0.0, -loss_sum, -loss_sum / num_pos)


def _focal_loss_ref(pred, gt):
    # Direct transcription of CenterNet's _neg_loss (PyTorch) in JAX / f32.
    pred = pred.astype(jnp.float32)
    gt = gt.astype(jnp.float32)
    pos_inds = (gt == 1.0).astype(jnp.float32)
    neg_inds = (pred < 1.0).astype(jnp.float32)
    neg_weights = (1.0 - gt) ** 4
    pos_loss = ((1.0 - pred) ** 2) * jnp.log(pred) * pos_inds
    neg_loss = neg_weights * (pred ** 2) * jnp.log(1.0 - pred) * neg_inds
    num_pos = pos_inds.sum()
    pos_loss = pos_loss.sum()
    neg_loss = neg_loss.sum()
    return jnp.where(num_pos == 0.0, -neg_loss, -(pos_loss + neg_loss) / num_pos)


if __name__ == "__main__":
    key = jax.random.PRNGKey(0)
    k1, k2, k3, k4 = jax.random.split(key, 4)

    # Case 1: NCHW heatmaps like the PyTorch module consumes.
    N, C, H, W = 2, 4, 16, 16
    pred = jax.nn.sigmoid(jax.random.normal(k1, (N, C, H, W), dtype=jnp.float32))
    gt = jax.random.uniform(k2, (N, C, H, W), dtype=jnp.float32, maxval=0.99)
    gt = gt.at[0, 0, 3, 5].set(1.0)
    gt = gt.at[1, 2, 10, 7].set(1.0)
    gt = gt.at[1, 3, 0, 0].set(1.0)

    loss = jax.jit(focal_loss)(pred, gt)
    jax.block_until_ready(loss)
    ref = _focal_loss_ref(pred, gt)
    assert jnp.allclose(loss, ref, rtol=1e-4, atol=1e-4), (loss, ref)

    # Case 2: no positives at all (exercises the num_pos == 0 branch).
    gt0 = jax.random.uniform(k3, (N, C, H, W), dtype=jnp.float32, maxval=0.99)
    loss0 = jax.jit(focal_loss)(pred, gt0)
    jax.block_until_ready(loss0)
    ref0 = _focal_loss_ref(pred, gt0)
    assert jnp.allclose(loss0, ref0, rtol=1e-4, atol=1e-4), (loss0, ref0)

    # Case 3: element count not lane-divisible + ragged last block
    # (small max_block_rows), exercising the tail and pl.when mask paths.
    shp = (3, 5, 24, 36)   # 12960 elements -> lanes=128, 32-element JAX tail
    pred3 = jax.nn.sigmoid(jax.random.normal(k4, shp, dtype=jnp.float32))
    gt3 = jax.random.uniform(k2, shp, dtype=jnp.float32, maxval=0.99)
    gt3 = gt3.at[0, 0, 0, 0].set(1.0)
    gt3 = gt3.at[2, 4, 23, 35].set(1.0)
    loss3 = jax.jit(lambda p, g: focal_loss(p, g, max_block_rows=16))(pred3, gt3)
    jax.block_until_ready(loss3)
    ref3 = _focal_loss_ref(pred3, gt3)
    assert jnp.allclose(loss3, ref3, rtol=1e-4, atol=1e-4), (loss3, ref3)

    print("KERNEL_OK")
</pallas_src>

<mosaic_0001>
module attributes {stable_mosaic.version = 11 : i64} {
  func.func @kernel(%arg0: i32, %arg1: memref<4x512xf32, #tpu.memory_space<vmem>>, %arg2: memref<4x512xf32, #tpu.memory_space<vmem>>, %arg3: memref<1x8x128xf32, #tpu.memory_space<vmem>>) attributes {dimension_semantics = [#tpu.dimension_semantics<parallel>], iteration_bounds = array<i64: 1>, scalar_prefetch = 0 : i64, scratch_operands = 0 : i64, tpu.core_type = #tpu.core_type<tc>, window_params = [{transform_indices = @transform_0, window_bounds = array<i64: 4, 512>}, {transform_indices = @transform_1, window_bounds = array<i64: 4, 512>}, {transform_indices = @transform_2, window_bounds = array<i64: 1, 8, 128>}]} {
    %c0 = arith.constant 0 : index
    %c0_0 = arith.constant 0 : index
    %0 = vector.load %arg1[%c0, %c0_0] : memref<4x512xf32, #tpu.memory_space<vmem>>, vector<4x512xf32>
    %c0_1 = arith.constant 0 : index
    %c0_2 = arith.constant 0 : index
    %1 = vector.load %arg2[%c0_1, %c0_2] : memref<4x512xf32, #tpu.memory_space<vmem>>, vector<4x512xf32>
    %cst = arith.constant 1.000000e+00 : f32
    %2 = vector.broadcast %cst : f32 to vector<4x512xf32>
    %3 = arith.subf %2, %0 : vector<4x512xf32>
    %cst_3 = arith.constant 1.000000e+00 : f32
    %4 = vector.broadcast %cst_3 : f32 to vector<4x512xf32>
    %5 = arith.subf %4, %1 : vector<4x512xf32>
    %6 = arith.mulf %5, %5 : vector<4x512xf32>
    %7 = arith.mulf %6, %6 : vector<4x512xf32>
    %8 = math.log %0 : vector<4x512xf32>
    %9 = math.log %3 : vector<4x512xf32>
    %10 = arith.mulf %3, %3 : vector<4x512xf32>
    %11 = arith.mulf %10, %8 : vector<4x512xf32>
    %12 = arith.mulf %0, %0 : vector<4x512xf32>
    %13 = arith.mulf %7, %12 : vector<4x512xf32>
    %14 = arith.mulf %13, %9 : vector<4x512xf32>
    %cst_4 = arith.constant 1.000000e+00 : f32
    %15 = vector.broadcast %cst_4 : f32 to vector<4x512xf32>
    %16 = arith.cmpf oeq, %1, %15 : vector<4x512xf32>
    %cst_5 = arith.constant 1.000000e+00 : f32
    %17 = vector.broadcast %cst_5 : f32 to vector<4x512xf32>
    %18 = arith.cmpf olt, %0, %17 : vector<4x512xf32>
    %cst_6 = arith.constant 0.000000e+00 : f32
    %19 = vector.broadcast %cst_6 : f32 to vector<4x512xf32>
    %20 = arith.select %16, %11, %19 : vector<4x512xi1>, vector<4x512xf32>
    %cst_7 = arith.constant 0.000000e+00 : f32
    %21 = vector.broadcast %cst_7 : f32 to vector<4x512xf32>
    %22 = arith.select %18, %14, %21 : vector<4x512xi1>, vector<4x512xf32>
    %23 = arith.addf %20, %22 : vector<4x512xf32>
    %cst_8 = arith.constant 1.000000e+00 : f32
    %cst_9 = arith.constant 0.000000e+00 : f32
    %24 = vector.broadcast %cst_8 : f32 to vector<4x512xf32>
    %25 = vector.broadcast %cst_9 : f32 to vector<4x512xf32>
    %26 = arith.select %16, %24, %25 : vector<4x512xi1>, vector<4x512xf32>
    %27 = vector.shape_cast %23 : vector<4x512xf32> to vector<1x4x512xf32>
    %cst_10 = arith.constant dense<0.000000e+00> : vector<1xf32>
    %28 = vector.multi_reduction <add>, %27, %cst_10 [1, 2] : vector<1x4x512xf32> to vector<1xf32>
    %29 = vector.shape_cast %28 : vector<1xf32> to vector<1x1x1xf32>
    %30 = vector.extract %29[0, 0, 0] : f32 from vector<1x1x1xf32>
    %31 = vector.shape_cast %26 : vector<4x512xf32> to vector<1x4x512xf32>
    %cst_11 = arith.constant dense<0.000000e+00> : vector<1xf32>
    %32 = vector.multi_reduction <add>, %31, %cst_11 [1, 2] : vector<1x4x512xf32> to vector<1xf32>
    %33 = vector.shape_cast %32 : vector<1xf32> to vector<1x1x1xf32>
    %34 = vector.extract %33[0, 0, 0] : f32 from vector<1x1x1xf32>
    %35 = tpu.iota {dimensions = array<i32: 1>} : vector<1x8x128xi32>
    %36 = tpu.iota {dimensions = array<i32: 2>} : vector<1x8x128xi32>
    %c0_i32 = arith.constant 0 : i32
    %37 = vector.broadcast %c0_i32 : i32 to vector<1x8x128xi32>
    %38 = arith.cmpi eq, %35, %37 : vector<1x8x128xi32>
    %c0_i32_12 = arith.constant 0 : i32
    %39 = vector.broadcast %c0_i32_12 : i32 to vector<1x8x128xi32>
    %40 = arith.cmpi eq, %36, %39 : vector<1x8x128xi32>
    %41 = arith.andi %38, %40 : vector<1x8x128xi1>
    %cst_13 = arith.constant 0.000000e+00 : f32
    %42 = vector.broadcast %30 : f32 to vector<1x8x128xf32>
    %43 = vector.broadcast %cst_13 : f32 to vector<1x8x128xf32>
    %44 = arith.select %41, %42, %43 : vector<1x8x128xi1>, vector<1x8x128xf32>
    %c0_i32_14 = arith.constant 0 : i32
    %45 = vector.broadcast %c0_i32_14 : i32 to vector<1x8x128xi32>
    %46 = arith.cmpi eq, %35, %45 : vector<1x8x128xi32>
    %c1_i32 = arith.constant 1 : i32
    %47 = vector.broadcast %c1_i32 : i32 to vector<1x8x128xi32>
    %48 = arith.cmpi eq, %36, %47 : vector<1x8x128xi32>
    %49 = arith.andi %46, %48 : vector<1x8x128xi1>
    %50 = vector.broadcast %34 : f32 to vector<1x8x128xf32>
    %51 = arith.select %49, %50, %44 : vector<1x8x128xi1>, vector<1x8x128xf32>
    %c0_15 = arith.constant 0 : index
    %c0_16 = arith.constant 0 : index
    %c0_17 = arith.constant 0 : index
    %52 = vector.load %arg3[%c0_15, %c0_16, %c0_17] : memref<1x8x128xf32, #tpu.memory_space<vmem>>, vector<1x8x128xf32>
    tpu.vector_store %arg3[%c0_15, %c0_16, %c0_17], %51 {strides = array<i32>} : memref<1x8x128xf32, #tpu.memory_space<vmem>>, vector<1x8x128xf32>,
    return
  }
  func.func @transform_0(%arg0: i32) -> (i32, i32) {
    %c0_i32 = arith.constant 0 : i32
    %c0_i32_0 = arith.constant 0 : i32
    return %arg0, %c0_i32 : i32, i32
  }
  func.func @transform_1(%arg0: i32) -> (i32, i32) {
    %c0_i32 = arith.constant 0 : i32
    %c0_i32_0 = arith.constant 0 : i32
    return %arg0, %c0_i32 : i32, i32
  }
  func.func @transform_2(%arg0: i32) -> (i32, i32, i32) {
    %c0_i32 = arith.constant 0 : i32
    %c0_i32_0 = arith.constant 0 : i32
    %c0_i32_1 = arith.constant 0 : i32
    return %arg0, %c0_i32, %c0_i32_0 : i32, i32, i32
  }
}

</mosaic_0001>

<bundles_post_ra>
// kernel: focal_loss.1
= control target key start
LH: loop header
LB: loop body
LE: loop exit
PB: predicated region body
PF: predicated region fallthrough
CT: control target
= control target key end

     0   :  { %v129_v20 = vmov 0.0   ;;  %vm59_vm4 = vcmask 1043456   ;;  %s172_s0 = inlined_call_operand.vmem [shape: f32[4,512], index: 0, kind: input, shape index: {}]   ;;  %s173_s1 = inlined_call_operand.vmem [shape: f32[4,512], index: 1, kind: input, shape index: {}]   ;;  %s174_s2 = inlined_call_operand.vmem [shape: f32[1,8,128], index: 2, kind: output, shape index: {}]  }
   0x1   :  { %v11_v0 = vld [vmem:[%s172_s0] sm:$0xff]  ;;  %v12_v1 = vld [vmem:[%s172_s0 + $0x8] sm:$0xff] }
   0x2   :  { %v13_v2 = vld [vmem:[%s173_s1] sm:$0xff]  ;;  %v14_v3 = vld [vmem:[%s173_s1 + $0x8] sm:$0xff]  ;;  %v15_v4 = vsub.f32 1.0, %v11_v0  ;;  %v16_v5 = vsub.f32 1.0, %v12_v1  ;;  %121 = vlog2.f32 %v11_v0  ;;  %v35_v11 = vmul.f32 %v11_v0, %v11_v0 }
   0x3   :  { %123 = vlog2.f32 %v12_v1  ;;  %v17_v6 = vsub.f32 1.0, %v13_v2  ;;  %v18_v7 = vsub.f32 1.0, %v14_v3  ;;  %v36_v13 = vmul.f32 %v12_v1, %v12_v1 }
   0x4   :  { %125 = vlog2.f32 %v15_v4  ;;  %v31_v14 = vmul.f32 %v15_v4, %v15_v4  ;;  %v32_v16 = vmul.f32 %v16_v5, %v16_v5  ;;  %vm41_vm0 = vcmp.eq.f32.partialorder %v13_v2, 1.0 }
   0x5   :  { %127 = vlog2.f32 %v16_v5  ;;  %v19_v8 = vmul.f32 %v17_v6, %v17_v6  ;;  %v20_v9 = vmul.f32 %v18_v7, %v18_v7  ;;  %v51_v21 = vsel %vm41_vm0, 1.0, %v129_v20 }
   0x6   :  { %vm42_vm1 = vcmp.eq.f32.partialorder %v14_v3, 1.0  ;;  %vm43_vm2 = vcmp.lt.f32.partialorder %v11_v0, 1.0  ;;  %v78_v30 = vcombine.high %v51_v21, %v51_v21  ;;  %vm44_vm3 = vcmp.lt.f32.partialorder %v12_v1, 1.0 }
   0x7   :  { %v21_v10 = vmul.f32 %v19_v8, %v19_v8  ;;  %v22_v12 = vmul.f32 %v20_v9, %v20_v9  ;;  %v82_v38 = vsel %vm59_vm4, %v51_v21, 0.0  ;;  %v52_v41 = vsel %vm42_vm1, 1.0, %v129_v20 }
   0x8   :  { %v83_v39 = vsel %vm59_vm4, %v78_v30, 0.0  ;;  %v79_v48 = vcombine.high %v52_v41, %v52_v41  ;;  %v85_v49 = vsel %vm59_vm4, %v52_v41, 0.0  ;;  %v98_v7 = vlaneseq }
   0x9   :  { %v37_v19 = vmul.f32 %v35_v11, %v21_v10  ;;  %v38_v24 = vmul.f32 %v36_v13, %v22_v12  ;;  %v84_v45 = vadd.f32 %v83_v39, %v82_v38 }
   0xa   :  { %v87_v54 = vsel %vm59_vm4, %v79_v48, 0.0  ;;  %v99_v8 = vshrl.u32 %v98_v7, 7  ;;  %v101_v9 = vand.u32 127, %v98_v7 }
   0xb   :  { %v86_v53 = vadd.f32 %v85_v49, %v84_v45 }
   0xc   :  { %vm102_vm5 = vcmp.eq.s32.totalorder %v99_v8, 0  ;;  %vm103_vm6 = vcmp.eq.s32.totalorder %v101_v9, 0  ;;  %vm107_vm7 = vcmp.eq.s32.totalorder %v101_v9, 1 }
   0xd   :  { %v88_v56 = vadd.f32 %v87_v54, %v86_v53  ;;  %vm104_vm8 = vmand %vm102_vm5, %vm103_vm6 }
   0xe   :  { %vm108_vm9 = vmand %vm102_vm5, %vm107_vm7 }
   0xf   :  { %v122_v15 = vpop.eup %121 }
  0x10   :  { %v124_v17 = vpop.eup %123  ;;  %v24_v18 = vmul.f32 0.6931472, %v122_v15 }
  0x11   :  { %v126_v22 = vpop.eup %125  ;;  %v26_v23 = vmul.f32 0.6931472, %v124_v17 }
  0x12   :  { %v128_v25 = vpop.eup %127  ;;  %v28_v26 = vmul.f32 0.6931472, %v126_v22  ;;  %v33_v27 = vmul.f32 %v31_v14, %v24_v18 }
  0x13   :  { %v30_v28 = vmul.f32 0.6931472, %v128_v25  ;;  %v34_v29 = vmul.f32 %v32_v16, %v26_v23 }
  0x14   :  { %v39_v31 = vmul.f32 %v37_v19, %v28_v26  ;;  %v45_v32 = vsel %vm41_vm0, %v33_v27, 0.0 }
  0x15   :  { %v40_v33 = vmul.f32 %v38_v24, %v30_v28  ;;  %v46_v34 = vsel %vm42_vm1, %v34_v29, 0.0 }
  0x16   :  { %v47_v35 = vsel %vm43_vm2, %v39_v31, 0.0 }
  0x17   :  { %v48_v36 = vsel %vm44_vm3, %v40_v33, 0.0  ;;  %v49_v37 = vadd.f32 %v47_v35, %v45_v32 }
  0x18   :  { %v50_v40 = vadd.f32 %v48_v36, %v46_v34 }
  0x19   :  { %v55_v42 = vcombine.high %v49_v37, %v49_v37  ;;  %v60_v43 = vsel %vm59_vm4, %v49_v37, 0.0 }
  0x1a   :  { %v56_v44 = vcombine.high %v50_v40, %v50_v40  ;;  %v63_v47 = vsel %vm59_vm4, %v50_v40, 0.0 }
  0x1b   :  { %v61_v46 = vsel %vm59_vm4, %v55_v42, 0.0 }
  0x1c   :  { %v62_v50 = vadd.f32 %v61_v46, %v60_v43  ;;  %v65_v51 = vsel %vm59_vm4, %v56_v44, 0.0 }
  0x1e   :  { %v64_v52 = vadd.f32 %v63_v47, %v62_v50 }
  0x20   :  { %v66_v55 = vadd.f32 %v65_v51, %v64_v52 }
  0x22   :  { %67 = vadd.xlane.f32.xlu0 %v66_v55 }
  0x26   :  { %89 = vadd.xlane.f32.xlu0 %v88_v56 }
  0xab   :  { %v68_v57 = vpop.xlane.xlu0 %67 }
  0xac   :  { %v69_v58 = vrot.slane %v68_v57, 4 }
  0xae   :  { %v70_v59 = vadd.f32 %v69_v58, %v68_v57 }
  0xaf   :  { %v90_v60 = vpop.xlane.xlu0 %89 }
  0xb0   :  { %v71_v61 = vrot.slane %v70_v59, 2  ;;  %v91_v62 = vrot.slane %v90_v60, 4 }
  0xb2   :  { %v92_v63 = vadd.f32 %v91_v62, %v90_v60  ;;  %v72_v0 = vadd.f32 %v71_v61, %v70_v59 }
  0xb4   :  { %v93_v1 = vrot.slane %v92_v63, 2  ;;  %v73_v2 = vrot.slane %v72_v0, 1 }
  0xb6   :  { %v94_v3 = vadd.f32 %v93_v1, %v92_v63  ;;  %v74_v4 = vadd.f32 %v73_v2, %v72_v0 }
  0xb8   :  { %116 = vpush %v74_v4  ;;  %v95_v5 = vrot.slane %v94_v3, 1 }
  0xba   :  { %v96_v6 = vadd.f32 %v95_v5, %v94_v3 }
  0xbc   :  { %118 = vpush %v96_v6 }
  0xe9   :  { %s117_s0 = spop %116 }
  0xea   :  { %v105_v10 = vstv %s117_s0 }
  0xeb   :  { %v106_v11 = vsel %vm104_vm8, %v105_v10, 0.0 }
  0xed   :  { %s119_s1 = spop %118 }
  0xee   :  { %v109_v12 = vstv %s119_s1 }
  0xef   :  { %v110_v13 = vsel %vm108_vm9, %v109_v12, %v106_v11 }
  0xf0   :  { %111 = vst [vmem:[%s174_s2] sm:$0xff] %v110_v13 }

</bundles_post_ra>
